<compile_context>
chip_gen: v7x
topology: tpu7x:2x2x1
jax: 0.10.0
libtpu: 0.0.40
codegen_flags: <defaults>
</compile_context>

<pallas_src>
import functools

import jax
import jax.numpy as jnp
from jax.experimental import pallas as pl
from jax.experimental.pallas import tpu as pltpu


def _conv_relu_kernel(x_ref, w_ref, shift_ref, o_ref, p_ref, *, KH, KW, Wp, HWp):
    """One block of Nb images per grid step.

    x_ref:     (Nb, Cin, Lpad)        flattened zero-padded images (compute dtype, bf16)
    w_ref:     (Cout, KH*KW*Cin)      scale-folded weights (compute dtype)
    shift_ref: (Cout, 1)              additive term (conv bias / BN fold), f32
    o_ref:     (Nb, Cout, H*Wp)       "dilated" output (junk cols stripped in wrapper)
    p_ref:     (KH*KW*Cin, H*Wp)      VMEM im2col scratch (compute dtype)
    """
    Nb, Cin, _ = x_ref.shape

    for n in range(Nb):
        # im2col: row (i*KW + j)*Cin + c of P holds x_pad[c, y+i, x+j] for every
        # dilated output column q = y*Wp + x.  Each tap is a contiguous lane slice
        # of the flattened padded image at static offset i*Wp + j.
        for i in range(KH):
            for j in range(KW):
                tap = i * KW + j
                off = i * Wp + j
                p_ref[tap * Cin:(tap + 1) * Cin, :] = x_ref[n, :, off:off + HWp]

        # Single MXU matmul per image: (Cout, K') x (K', H*Wp) -> f32 accumulate.
        acc = jnp.dot(w_ref[...], p_ref[...], preferred_element_type=jnp.float32)

        # Minimal epilogue: per-channel shift + ReLU + cast (scale already in weights).
        y = jnp.maximum(acc + shift_ref[...], 0.0)
        o_ref[n] = y.astype(o_ref.dtype)


def _pick_images_per_block(n_images, per_image_block_bytes, budget_bytes=8 << 20):
    """Largest divisor of N whose double-buffered block fits the budget, while keeping
    at least 2 grid steps (when N > 1) so v7x megacore can use both TensorCores."""
    best = 1
    for nb in range(1, n_images + 1):
        if n_images % nb:
            continue
        if 2 * nb * per_image_block_bytes > budget_bytes:
            continue
        if n_images > 1 and (n_images // nb) < 2:
            continue
        best = nb
    return best


def conv_unit_forward(x_nchw, weight, bias, *, kernel_size, stride=1,
                      bn=False, bn_params=None, compute_dtype=jnp.bfloat16):
    """Pallas implementation of ConvUnit.forward.

    x_nchw : (N, Cin, H, W)   PyTorch layout
    weight : (Cout, Cin, KH, KW)
    bias   : (Cout,)
    bn_params (if bn=True): dict with gamma, beta, running_mean, running_var
                            (inference-mode BatchNorm, eps=1e-3)
    returns (N, Cout, H, W) in NCHW.
    """
    assert stride == 1, "ConvUnit default stride=1 is supported"
    # TODO(synk): stride > 1 would need strided output-column gathering in-kernel.
    assert kernel_size % 2 == 1, "even kernel_size not supported (pad=(k-1)//2 shape mismatch)"

    N, Cin, H, W = x_nchw.shape
    Cout = weight.shape[0]
    KH = KW = kernel_size
    pad = (kernel_size - 1) // 2
    Hp, Wp = H + 2 * pad, W + 2 * pad
    HWp = H * Wp                                   # dilated output columns per image
    Kc = KH * KW * Cin                             # im2col contraction size

    # Flattened padded image length; taps read up to Hp*Wp + KW - 2, round lanes to 128.
    Lflat = Hp * Wp + KW - 1
    Lpad = ((Lflat + 127) // 128) * 128

    # --- fold conv bias (+ inference BatchNorm) into per-channel scale/shift ---
    bias = bias.astype(jnp.float32)
    if bn:
        eps = 1e-3
        gamma = bn_params["gamma"].astype(jnp.float32)
        beta = bn_params["beta"].astype(jnp.float32)
        mean = bn_params["running_mean"].astype(jnp.float32)
        var = bn_params["running_var"].astype(jnp.float32)
        scale = gamma / jnp.sqrt(var + eps)
        shift = (bias - mean) * scale + beta
    else:
        scale = jnp.ones((Cout,), jnp.float32)
        shift = bias

    # Fold scale into the weights; reorder to (Cout, tap-major/channel-minor K').
    w_eff = weight.astype(jnp.float32) * scale[:, None, None, None]
    w_mat = jnp.transpose(w_eff, (0, 2, 3, 1)).reshape(Cout, Kc).astype(compute_dtype)
    shift_col = shift.reshape(Cout, 1).astype(jnp.float32)

    # Zero-pad spatially, flatten each channel to 1-D (lane-dense), pad the tail.
    x_pad = jnp.pad(x_nchw.astype(compute_dtype), ((0, 0), (0, 0), (pad, pad), (pad, pad)))
    x_flat = x_pad.reshape(N, Cin, Hp * Wp)
    x_flat = jnp.pad(x_flat, ((0, 0), (0, 0), (0, Lpad - Hp * Wp)))

    # --- block sizing ---
    itemsize = jnp.dtype(compute_dtype).itemsize
    hwp_lanes = ((HWp + 127) // 128) * 128
    per_image_bytes = Cin * Lpad * itemsize + Cout * hwp_lanes * 4
    Nb = _pick_images_per_block(N, per_image_bytes)
    grid = (N // Nb,)

    kernel = functools.partial(_conv_relu_kernel, KH=KH, KW=KW, Wp=Wp, HWp=HWp)

    out = pl.pallas_call(
        kernel,
        out_shape=jax.ShapeDtypeStruct((N, Cout, HWp), x_nchw.dtype),
        grid_spec=pltpu.PrefetchScalarGridSpec(
            num_scalar_prefetch=0,
            grid=grid,
            in_specs=[
                pl.BlockSpec((Nb, Cin, Lpad), lambda b: (b, 0, 0)),
                pl.BlockSpec((Cout, Kc), lambda b: (0, 0)),
                pl.BlockSpec((Cout, 1), lambda b: (0, 0)),
            ],
            out_specs=pl.BlockSpec((Nb, Cout, HWp), lambda b: (b, 0, 0)),
            scratch_shapes=[pltpu.VMEM((Kc, HWp), compute_dtype)],
        ),
        compiler_params=pltpu.CompilerParams(
            dimension_semantics=("parallel",),
            vmem_limit_bytes=32 * 1024 * 1024),
    )(x_flat, w_mat, shift_col)

    # Free reshape + drop the (Wp - W) junk columns per row; already NCHW.
    return out.reshape(N, Cout, H, Wp)[:, :, :, :W]


if __name__ == "__main__":
    # Shapes consistent with ConvUnit(in_channels=4, out_channels=8, kernel_size=3)
    N, Cin, H, W = 2, 4, 16, 16
    Cout, K = 8, 3

    key = jax.random.PRNGKey(0)
    kx, kw, kb = jax.random.split(key, 3)
    x = jax.random.normal(kx, (N, Cin, H, W), dtype=jnp.float32)
    weight = jax.random.normal(kw, (Cout, Cin, K, K), dtype=jnp.float32) * 0.1
    bias = jax.random.normal(kb, (Cout,), dtype=jnp.float32) * 0.1

    fwd = jax.jit(functools.partial(conv_unit_forward, kernel_size=K, stride=1, bn=False))
    out = jax.block_until_ready(fwd(x, weight, bias))
    assert out.shape == (N, Cout, H, W)

    # Reference with the same bf16-rounded operands (kernel uses bf16 MXU inputs,
    # f32 accumulation), so only accumulation order differs.
    xr = x.astype(jnp.bfloat16).astype(jnp.float32)
    wr = weight.astype(jnp.bfloat16).astype(jnp.float32)
    ref = jax.lax.conv_general_dilated(
        xr, wr, window_strides=(1, 1), padding=((1, 1), (1, 1)),
        dimension_numbers=("NCHW", "OIHW", "NCHW"),
        precision=jax.lax.Precision.HIGHEST)
    ref = jnp.maximum(ref + bias[None, :, None, None], 0.0)
    err = float(jnp.max(jnp.abs(out - ref)))
    assert jnp.allclose(out, ref, atol=1e-3, rtol=1e-3), err

    print("KERNEL_OK")
</pallas_src>

<mosaic_0001>
module attributes {stable_mosaic.version = 11 : i64} {
  func.func @_conv_relu_kernel(%arg0: i32, %arg1: memref<1x4x384xbf16, #tpu.memory_space<vmem>>, %arg2: memref<8x36xbf16, #tpu.memory_space<vmem>>, %arg3: memref<8x1xf32, #tpu.memory_space<vmem>>, %arg4: memref<1x8x288xf32, #tpu.memory_space<vmem>>, %arg5: memref<36x288xbf16, #tpu.memory_space<vmem>>) attributes {dimension_semantics = [#tpu.dimension_semantics<parallel>], iteration_bounds = array<i64: 2>, scalar_prefetch = 0 : i64, scratch_operands = 1 : i64, tpu.core_type = #tpu.core_type<tc>, window_params = [{transform_indices = @transform_0, window_bounds = array<i64: 1, 4, 384>}, {pipeline_mode = #tpu.pipeline_mode<synchronous>, transform_indices = @transform_1, window_bounds = array<i64: 8, 36>}, {pipeline_mode = #tpu.pipeline_mode<synchronous>, transform_indices = @transform_2, window_bounds = array<i64: 8, 1>}, {transform_indices = @transform_3, window_bounds = array<i64: 1, 8, 288>}]} {
    %c0 = arith.constant 0 : index
    %c0_0 = arith.constant 0 : index
    %c0_1 = arith.constant 0 : index
    %0 = vector.load %arg1[%c0, %c0_0, %c0_1] : memref<1x4x384xbf16, #tpu.memory_space<vmem>>, vector<1x4x288xbf16>
    %1 = vector.shape_cast %0 : vector<1x4x288xbf16> to vector<4x288xbf16>
    %c0_2 = arith.constant 0 : index
    %c0_3 = arith.constant 0 : index
    %2 = vector.load %arg5[%c0_2, %c0_3] : memref<36x288xbf16, #tpu.memory_space<vmem>>, vector<4x288xbf16>
    tpu.vector_store %arg5[%c0_2, %c0_3], %1 {strides = array<i32>} : memref<36x288xbf16, #tpu.memory_space<vmem>>, vector<4x288xbf16>,
    %c0_4 = arith.constant 0 : index
    %c0_5 = arith.constant 0 : index
    %c1 = arith.constant 1 : index
    %3 = vector.load %arg1[%c0_4, %c0_5, %c1] : memref<1x4x384xbf16, #tpu.memory_space<vmem>>, vector<1x4x288xbf16>
    %4 = vector.shape_cast %3 : vector<1x4x288xbf16> to vector<4x288xbf16>
    %c4 = arith.constant 4 : index
    %c0_6 = arith.constant 0 : index
    %5 = vector.load %arg5[%c4, %c0_6] : memref<36x288xbf16, #tpu.memory_space<vmem>>, vector<4x288xbf16>
    tpu.vector_store %arg5[%c4, %c0_6], %4 {strides = array<i32>} : memref<36x288xbf16, #tpu.memory_space<vmem>>, vector<4x288xbf16>,
    %c0_7 = arith.constant 0 : index
    %c0_8 = arith.constant 0 : index
    %c2 = arith.constant 2 : index
    %6 = vector.load %arg1[%c0_7, %c0_8, %c2] : memref<1x4x384xbf16, #tpu.memory_space<vmem>>, vector<1x4x288xbf16>
    %7 = vector.shape_cast %6 : vector<1x4x288xbf16> to vector<4x288xbf16>
    %c8 = arith.constant 8 : index
    %c0_9 = arith.constant 0 : index
    %8 = vector.load %arg5[%c8, %c0_9] : memref<36x288xbf16, #tpu.memory_space<vmem>>, vector<4x288xbf16>
    tpu.vector_store %arg5[%c8, %c0_9], %7 {strides = array<i32>} : memref<36x288xbf16, #tpu.memory_space<vmem>>, vector<4x288xbf16>,
    %c0_10 = arith.constant 0 : index
    %c0_11 = arith.constant 0 : index
    %c18 = arith.constant 18 : index
    %9 = vector.load %arg1[%c0_10, %c0_11, %c18] : memref<1x4x384xbf16, #tpu.memory_space<vmem>>, vector<1x4x288xbf16>
    %10 = vector.shape_cast %9 : vector<1x4x288xbf16> to vector<4x288xbf16>
    %c12 = arith.constant 12 : index
    %c0_12 = arith.constant 0 : index
    %11 = vector.load %arg5[%c12, %c0_12] : memref<36x288xbf16, #tpu.memory_space<vmem>>, vector<4x288xbf16>
    tpu.vector_store %arg5[%c12, %c0_12], %10 {strides = array<i32>} : memref<36x288xbf16, #tpu.memory_space<vmem>>, vector<4x288xbf16>,
    %c0_13 = arith.constant 0 : index
    %c0_14 = arith.constant 0 : index
    %c19 = arith.constant 19 : index
    %12 = vector.load %arg1[%c0_13, %c0_14, %c19] : memref<1x4x384xbf16, #tpu.memory_space<vmem>>, vector<1x4x288xbf16>
    %13 = vector.shape_cast %12 : vector<1x4x288xbf16> to vector<4x288xbf16>
    %c16 = arith.constant 16 : index
    %c0_15 = arith.constant 0 : index
    %14 = vector.load %arg5[%c16, %c0_15] : memref<36x288xbf16, #tpu.memory_space<vmem>>, vector<4x288xbf16>
    tpu.vector_store %arg5[%c16, %c0_15], %13 {strides = array<i32>} : memref<36x288xbf16, #tpu.memory_space<vmem>>, vector<4x288xbf16>,
    %c0_16 = arith.constant 0 : index
    %c0_17 = arith.constant 0 : index
    %c20 = arith.constant 20 : index
    %15 = vector.load %arg1[%c0_16, %c0_17, %c20] : memref<1x4x384xbf16, #tpu.memory_space<vmem>>, vector<1x4x288xbf16>
    %16 = vector.shape_cast %15 : vector<1x4x288xbf16> to vector<4x288xbf16>
    %c20_18 = arith.constant 20 : index
    %c0_19 = arith.constant 0 : index
    %17 = vector.load %arg5[%c20_18, %c0_19] : memref<36x288xbf16, #tpu.memory_space<vmem>>, vector<4x288xbf16>
    tpu.vector_store %arg5[%c20_18, %c0_19], %16 {strides = array<i32>} : memref<36x288xbf16, #tpu.memory_space<vmem>>, vector<4x288xbf16>,
    %c0_20 = arith.constant 0 : index
    %c0_21 = arith.constant 0 : index
    %c36 = arith.constant 36 : index
    %18 = vector.load %arg1[%c0_20, %c0_21, %c36] : memref<1x4x384xbf16, #tpu.memory_space<vmem>>, vector<1x4x288xbf16>
    %19 = vector.shape_cast %18 : vector<1x4x288xbf16> to vector<4x288xbf16>
    %c24 = arith.constant 24 : index
    %c0_22 = arith.constant 0 : index
    %20 = vector.load %arg5[%c24, %c0_22] : memref<36x288xbf16, #tpu.memory_space<vmem>>, vector<4x288xbf16>
    tpu.vector_store %arg5[%c24, %c0_22], %19 {strides = array<i32>} : memref<36x288xbf16, #tpu.memory_space<vmem>>, vector<4x288xbf16>,
    %c0_23 = arith.constant 0 : index
    %c0_24 = arith.constant 0 : index
    %c37 = arith.constant 37 : index
    %21 = vector.load %arg1[%c0_23, %c0_24, %c37] : memref<1x4x384xbf16, #tpu.memory_space<vmem>>, vector<1x4x288xbf16>
    %22 = vector.shape_cast %21 : vector<1x4x288xbf16> to vector<4x288xbf16>
    %c28 = arith.constant 28 : index
    %c0_25 = arith.constant 0 : index
    %23 = vector.load %arg5[%c28, %c0_25] : memref<36x288xbf16, #tpu.memory_space<vmem>>, vector<4x288xbf16>
    tpu.vector_store %arg5[%c28, %c0_25], %22 {strides = array<i32>} : memref<36x288xbf16, #tpu.memory_space<vmem>>, vector<4x288xbf16>,
    %c0_26 = arith.constant 0 : index
    %c0_27 = arith.constant 0 : index
    %c38 = arith.constant 38 : index
    %24 = vector.load %arg1[%c0_26, %c0_27, %c38] : memref<1x4x384xbf16, #tpu.memory_space<vmem>>, vector<1x4x288xbf16>
    %25 = vector.shape_cast %24 : vector<1x4x288xbf16> to vector<4x288xbf16>
    %c32 = arith.constant 32 : index
    %c0_28 = arith.constant 0 : index
    %26 = vector.load %arg5[%c32, %c0_28] : memref<36x288xbf16, #tpu.memory_space<vmem>>, vector<4x288xbf16>
    tpu.vector_store %arg5[%c32, %c0_28], %25 {strides = array<i32>} : memref<36x288xbf16, #tpu.memory_space<vmem>>, vector<4x288xbf16>,
    %c0_29 = arith.constant 0 : index
    %c0_30 = arith.constant 0 : index
    %27 = vector.load %arg2[%c0_29, %c0_30] : memref<8x36xbf16, #tpu.memory_space<vmem>>, vector<8x36xbf16>
    %c0_31 = arith.constant 0 : index
    %c0_32 = arith.constant 0 : index
    %28 = vector.load %arg5[%c0_31, %c0_32] : memref<36x288xbf16, #tpu.memory_space<vmem>>, vector<36x288xbf16>
    %cst = arith.constant dense<0.000000e+00> : vector<8x288xf32>
    %29 = tpu.matmul %27, %28, %cst {dimension_numbers = #tpu.dot_dimension_numbers<[1], [0], [0], [1], [0, 0, 1, 1], [], []>} : vector<8x36xbf16>, vector<36x288xbf16>, vector<8x288xf32> -> vector<8x288xf32>
    %c0_33 = arith.constant 0 : index
    %c0_34 = arith.constant 0 : index
    %30 = vector.load %arg3[%c0_33, %c0_34] : memref<8x1xf32, #tpu.memory_space<vmem>>, vector<8x1xf32>
    %31 = vector.broadcast %30 : vector<8x1xf32> to vector<8x288xf32>
    %32 = arith.addf %29, %31 : vector<8x288xf32>
    %cst_35 = arith.constant 0.000000e+00 : f32
    %33 = vector.broadcast %cst_35 : f32 to vector<8x288xf32>
    %34 = arith.maximumf %32, %33 : vector<8x288xf32>
    %c0_36 = arith.constant 0 : index
    %c0_37 = arith.constant 0 : index
    %c0_38 = arith.constant 0 : index
    %35 = vector.load %arg4[%c0_36, %c0_37, %c0_38] : memref<1x8x288xf32, #tpu.memory_space<vmem>>, vector<1x8x288xf32>
    %36 = vector.shape_cast %35 : vector<1x8x288xf32> to vector<8x288xf32>
    %37 = vector.shape_cast %34 : vector<8x288xf32> to vector<1x8x288xf32>
    tpu.vector_store %arg4[%c0_36, %c0_37, %c0_38], %37 {strides = array<i32>} : memref<1x8x288xf32, #tpu.memory_space<vmem>>, vector<1x8x288xf32>,
    return
  }
  func.func @transform_0(%arg0: i32) -> (i32, i32, i32) {
    %c0_i32 = arith.constant 0 : i32
    %c0_i32_0 = arith.constant 0 : i32
    %c0_i32_1 = arith.constant 0 : i32
    return %arg0, %c0_i32, %c0_i32_0 : i32, i32, i32
  }
  func.func @transform_1(%arg0: i32) -> (i32, i32) {
    %c0_i32 = arith.constant 0 : i32
    %c0_i32_0 = arith.constant 0 : i32
    %c0_i32_1 = arith.constant 0 : i32
    return %c0_i32, %c0_i32_0 : i32, i32
  }
  func.func @transform_2(%arg0: i32) -> (i32, i32) {
    %c0_i32 = arith.constant 0 : i32
    %c0_i32_0 = arith.constant 0 : i32
    %c0_i32_1 = arith.constant 0 : i32
    return %c0_i32, %c0_i32_0 : i32, i32
  }
  func.func @transform_3(%arg0: i32) -> (i32, i32, i32) {
    %c0_i32 = arith.constant 0 : i32
    %c0_i32_0 = arith.constant 0 : i32
    %c0_i32_1 = arith.constant 0 : i32
    return %arg0, %c0_i32, %c0_i32_0 : i32, i32, i32
  }
}

</mosaic_0001>

<bundles_post_ra>
// kernel: conv_unit_forward.1
= control target key start
LH: loop header
LB: loop body
LE: loop exit
PB: predicated region body
PF: predicated region fallthrough
CT: control target
= control target key end

     0   :  { %s768_s12 = smov 0   ;;  %s846_s0 = inlined_call_operand.vmem [shape: bf16[2,4,384], index: 0, kind: input, shape index: {}]   ;;  %s847_s1 = inlined_call_operand.vmem [shape: bf16[8,36], index: 1, kind: input, shape index: {}]   ;;  %s848_s2 = inlined_call_operand.vmem [shape: f32[8,1], index: 2, kind: input, shape index: {}]   ;;  %s849_s3 = inlined_call_operand.vmem [shape: f32[2,8,288], index: 3, kind: output, shape index: {}]  }
   0x1 LB: > { %s650_s13 = sadd.s32 4294967295, %s734_s12   ;;  %p654_p0 = scmp.ge.s32.totalorder %s734_s12, 1  ;;  %s734_s12 = sphi %s768_s12, %s13_s12  }
   0x2   : > { %p137_p1 = scmp.lt.s32.totalorder %s734_s12, 3 }
   0x4   : > { %p138_p2 = pnand %p654_p0, %p137_p1 }
   0x5   : > { %p161_p3 = scmp.lt.s32.totalorder (!%p138_p2), %s650_s13, 1  ;;  %v185_v0 = vlaneseq (!%p138_p2)  ;;  %v736_v1 = vmov (!%p138_p2), 1983009808   ;;  %s737_s18 = smov (!%p138_p2), 126   ;;  %vm192_vm0 = vcmask (!%p138_p2), 254976   ;;  %v741_v24 = vmov (!%p138_p2), 0.0  }
   0x6   : > { %141 = sbr.rel (%p138_p2) target bundleno = 400 (0x190), region = 32  ;;  %v183_v2 = vunpack.c.l.s4 (!%p138_p2), %v736_v1  ;;  %s738_s19 = smov (!%p138_p2), 127   ;;  %676 = vmatprep.subr.bf16.mxu1 (!%p138_p2), %v741_v24  ;;  %vm746_vm1 = vmmov (!%p138_p2), 0   ;;  %v747_v42 = vmov (!%p138_p2), 0   ;;  %v447_v43 = vld [vmem:[%s848_s2] sm:$0xff] (!%p138_p2)  ;;  %vm224_vm2 = vcmask (!%p138_p2), 257026  }
   0x7   : > { %v186_v3 = vshrl.u32 (!%p138_p2), %v185_v0, 7  ;;  %s739_s20 = smov (!%p138_p2), 110   ;;  %s740_s21 = smov (!%p138_p2), 109   ;;  %682 = vmatprep.mubr.msk.bf16.mxu1 (!%p138_p2), %vm746_vm1, %v741_v24  ;;  %539 = vmatprep.mubr.bf16.mxu0 (!%p138_p2), %v747_v42  ;;  %vm217_vm3 = vcmask (!%p138_p2), 1043456   ;;  %vm250_vm4 = vcmask (!%p138_p2), 1031168   ;;  %vm219_vm5 = vcmask (!%p138_p2), 1039360  }
   0x8   : > { %v184_v4 = vunpack.c.0.s8 (!%p138_p2), %v183_v2  ;;  %s742_s22 = smov (!%p138_p2), 108   ;;  %s743_s23 = smov (!%p138_p2), 92   ;;  %708 = vset.pattern.permute.xlu0 (!%p138_p2), %v747_v42  ;;  %vm310_vm6 = vcmask (!%p138_p2), 891904   ;;  %vm280_vm7 = vcmask (!%p138_p2), 900096   ;;  %vm340_vm8 = vcmask (!%p138_p2), 883712  }
   0x9   : > { %s744_s24 = smov (!%p138_p2), 91   ;;  %s745_s25 = smov (!%p138_p2), 90   ;;  %vm370_vm9 = vcmask (!%p138_p2), 752640   ;;  %vm400_vm10 = vcmask (!%p138_p2), 744448   ;;  %vm430_vm11 = vcmask (!%p138_p2), 736256   ;;  %vm497_vm12 = vcmask (!%p138_p2), 1041408  }
   0xa   : > { %v779_v5 = vsub.s32 (!%p138_p2), %v184_v4, %v186_v3  ;;  %vm493_vm13 = vcmask (!%p138_p2), 293888   ;;  %vm593_vm14 = vcmask (!%p138_p2), 261120  }
   0xd   : > { %s851_s13 = smov (!%p161_p3, %s650_s13), 1 }
   0xe   : > { %s686_s14 = smul.u32 6, %s851_s13 }
   0xf   : > { %s687_s30 = smul.u32 24, %s851_s13 }
  0x10   : > { %s784_s17 = scalar_lea.vmem %s846_s0, %s686_s14 }
  0x11   : > { %v226_v6 = vld [vmem:[%s784_s17] sm:$0x3f]  ;;  %s170_s6 = scalar_lea.vmem %s849_s3, %s687_s30 }
  0x12   : > { %v194_v7 = vld [vmem:[%s784_s17] sm:$0x3f]  ;;  %v235_v9 = vrot.slane %v226_v6, %v779_v5  ;;  %v228_v12 = vcombine.high %v226_v6, %v226_v6 }
  0x13   : > { %v256_v8 = vld [vmem:[%s784_s17] sm:$0x3f]  ;;  %v210_v10 = vrot.slane %v194_v7, %v779_v5  ;;  %v196_v14 = vcombine.low %v194_v7, %v194_v7 }
  0x14   : > { %v286_v11 = vld [vmem:[%s784_s17] sm:$0x3f]  ;;  %243 = vrot.lane.b32.xlu1 %v235_v9, %s737_s18  ;;  %v272_v15 = vrot.slane %v256_v8, %v779_v5  ;;  %v242_v19 = vrot.slane %v228_v12, %v779_v5  ;;  %v258_v21 = vcombine.low %v256_v8, %v256_v8 }
  0x15   : > { %v172_v13 = vld [vmem:[%s784_s17] sm:$0x3f]  ;;  %213 = vrot.lane.b32.xlu0 %v210_v10, %s738_s19  ;;  %v295_v16 = vrot.slane %v286_v11, %v779_v5  ;;  %v288_v17 = vcombine.high %v286_v11, %v286_v11  ;;  %v203_v20 = vrot.slane %v196_v14, %v779_v5 }
  0x16   : > { %657 = vst.sshfl [vmem:[#allocation2] sm:$0xf pattern:$0x76325410] %v172_v13  ;;  %v174_v18 = vcombine.high %v172_v13, %v172_v13  ;;  %v316_v22 = vld [vmem:[%s784_s17] sm:$0x3f]  ;;  %v265_v26 = vrot.slane %v258_v21, %v779_v5 }
  0x17   : > { %v302_v25 = vrot.slane %v288_v17, %v779_v5  ;;  %v318_v27 = vcombine.low %v316_v22, %v316_v22  ;;  %v346_v28 = vld [vmem:[%s784_s17] sm:$0x3f]  ;;  %v332_v29 = vrot.slane %v316_v22, %v779_v5 }
  0x18   : > { %275 = vrot.lane.b32.xlu1 %v272_v15, %s739_s20  ;;  %v188_v23 = vrot.slane %v174_v18, %v779_v5  ;;  %v348_v31 = vcombine.high %v346_v28, %v346_v28  ;;  %v376_v32 = vld [vmem:[%s784_s17] sm:$0x3f]  ;;  %v355_v34 = vrot.slane %v346_v28, %v779_v5 }
  0x19   : > { %303 = vrot.lane.b32.xlu0 %v295_v16, %s740_s21  ;;  %v325_v30 = vrot.slane %v318_v27, %v779_v5  ;;  %v378_v35 = vcombine.low %v376_v32, %v376_v32  ;;  %v406_v36 = vld [vmem:[%s784_s17] sm:$0x3f]  ;;  %v392_v37 = vrot.slane %v376_v32, %v779_v5 }
  0x1a   : > { %193 = vst.msk [vmem:[#allocation2 + $0x8] sm:$0x3] %vm192_vm0, %v188_v23  ;;  %v362_v33 = vrot.slane %v348_v31, %v779_v5  ;;  %v408_v39 = vcombine.high %v406_v36, %v406_v36  ;;  %v415_v41 = vrot.slane %v406_v36, %v779_v5 }
  0x1b   : > { %v385_v38 = vrot.slane %v378_v35, %v779_v5 }
  0x1c   : > { %245 = vrot.lane.b32.xlu1 %v242_v19, %s737_s18  ;;  %v422_v40 = vrot.slane %v408_v39, %v779_v5 }
  0x1d   : > { %211 = vrot.lane.b32.xlu0 %v203_v20, %s738_s19 }
  0x20   : > { %305 = vrot.lane.b32.xlu1 %v302_v25, %s740_s21 }
  0x21   : > { %273 = vrot.lane.b32.xlu0 %v265_v26, %s739_s20 }
  0x24   : > { %335 = vrot.lane.b32.xlu1 %v332_v29, %s742_s22 }
  0x25   : > { %333 = vrot.lane.b32.xlu0 %v325_v30, %s742_s22 }
  0x28   : > { %365 = vrot.lane.b32.xlu1 %v362_v33, %s743_s23 }
  0x29   : > { %363 = vrot.lane.b32.xlu0 %v355_v34, %s743_s23 }
  0x2c   : > { %395 = vrot.lane.b32.xlu1 %v392_v37, %s744_s24 }
  0x2d   : > { %393 = vrot.lane.b32.xlu0 %v385_v38, %s744_s24 }
  0x30   : > { %425 = vrot.lane.b32.xlu1 %v422_v40, %s745_s25  ;;  %v436_v40 = vld [vmem:[%s847_s1] sm:$0xf] }
  0x31   : > { %423 = vrot.lane.b32.xlu0 %v415_v41, %s745_s25 }
  0x35   : > { %450 = vperm.xlu0 %708, %v447_v43  }
  0x86   : > { %v244_v44 = vpop.permute.xlu1 %243 }
  0x87   : > { %v214_v45 = vpop.permute.xlu0 %213  ;;  %v247_v50 = vrot.slane %v244_v44, 4 }
  0x88   : > { %225 = vst.msk [vmem:[#allocation2 + $0x8] sm:$0xc] %vm224_vm2, %v214_v45  ;;  %v216_v51 = vrot.slane %v214_v45, 4 }
  0x8a   : > { %v276_v46 = vpop.permute.xlu1 %275 }
  0x8b   : > { %v304_v47 = vpop.permute.xlu0 %303  ;;  %285 = vst.msk [vmem:[#allocation2 + $0x14] sm:$0xc] %vm224_vm2, %v276_v46  ;;  %v278_v60 = vrot.slane %v276_v46, 4 }
  0x8c   : > { %v307_v61 = vrot.slane %v304_v47, 4 }
  0x8e   : > { %v246_v48 = vpop.permute.xlu1 %245 }
  0x8f   : > { %v212_v49 = vpop.permute.xlu0 %211  ;;  %v248_v52 = vrot.slane %v246_v48, 4  ;;  %255 = vst.msk [vmem:[#allocation2 + $0x14] sm:$0x3] %vm192_vm0, %v246_v48 }
  0x90   : > { %v215_v53 = vrot.slane %v212_v49, 4 }
  0x91   : > { %v249_v54 = vsel %vm217_vm3, %v247_v50, %v248_v52 }
  0x92   : > { %v218_v55 = vsel %vm217_vm3, %v215_v53, %v216_v51  ;;  %v251_v56 = vsel %vm250_vm4, %v244_v44, %v249_v54  ;;  %v306_v58 = vpop.permute.xlu1 %305 }
  0x93   : > { %v220_v57 = vsel %vm219_vm5, %v212_v49, %v218_v55  ;;  %v274_v59 = vpop.permute.xlu0 %273  ;;  %254 = vst [vmem:[#allocation2 + $0xc] sm:$0x33] %v251_v56  ;;  %v308_v62 = vrot.slane %v306_v58, 4  ;;  %315 = vst.msk [vmem:[#allocation2 + $0x20] sm:$0x3] %vm192_vm0, %v306_v58 }
  0x94   : > { %223 = vst [vmem:[#allocation2] sm:$0xcc] %v220_v57  ;;  %v277_v63 = vrot.slane %v274_v59, 4 }
  0x95   : > { %v309_v0 = vsel %vm217_vm3, %v307_v61, %v308_v62 }
  0x96   : > { %v279_v1 = vsel %vm217_vm3, %v277_v63, %v278_v60  ;;  %v311_v2 = vsel %vm310_vm6, %v304_v47, %v309_v0  ;;  %v336_v4 = vpop.permute.xlu1 %335  ;;  %v718_v6 = vld [vmem:[#allocation2 + $0x8] ss:$12 sps:$4 sm:$0xff]  }
  0x97   : > { %v281_v3 = vsel %vm280_vm7, %v274_v59, %v279_v1  ;;  %v334_v5 = vpop.permute.xlu0 %333  ;;  %314 = vst [vmem:[#allocation2 + $0x18] sm:$0x33] %v311_v2  ;;  %v338_v7 = vrot.slane %v336_v4, 4  ;;  %345 = vst.msk [vmem:[#allocation2 + $0x20] sm:$0xc] %vm224_vm2, %v336_v4  ;;  %677 = vmatpush3.bf16.msra.mxu1 %v718_v6 }
  0x98   : > { %284 = vst [vmem:[#allocation2 + $0xc] sm:$0xcc] %v281_v3  ;;  %v337_v8 = vrot.slane %v334_v5, 4  ;;  %678 = vmatprep.subr.bf16.mxu1 %v741_v24 }
  0x9a   : > { %v339_v9 = vsel %vm217_vm3, %v337_v8, %v338_v7  ;;  %v366_v11 = vpop.permute.xlu1 %365 }
  0x9b   : > { %v341_v10 = vsel %vm340_vm8, %v334_v5, %v339_v9  ;;  %v364_v12 = vpop.permute.xlu0 %363  ;;  %v368_v13 = vrot.slane %v366_v11, 4  ;;  %375 = vst.msk [vmem:[#allocation2 + $0x2c] sm:$0x3] %vm192_vm0, %v366_v11  ;;  %v437_v16 = vld [vmem:[#allocation2] sm:$0xff] }
  0x9c   : > { %344 = vst [vmem:[#allocation2 + $0x18] sm:$0xcc] %v341_v10  ;;  %v367_v14 = vrot.slane %v364_v12, 4 }
  0x9e   : > { %v369_v15 = vsel %vm217_vm3, %v367_v14, %v368_v13  ;;  %v396_v18 = vpop.permute.xlu1 %395 }
  0x9f   : > { %v371_v17 = vsel %vm370_vm9, %v364_v12, %v369_v15  ;;  %v394_v19 = vpop.permute.xlu0 %393  ;;  %v439_v20 = vld [vmem:[#allocation2 + $0xc] sm:$0xff]  ;;  %v398_v22 = vrot.slane %v396_v18, 4  ;;  %405 = vst.msk [vmem:[#allocation2 + $0x2c] sm:$0xc] %vm224_vm2, %v396_v18 }
  0xa0   : > { %v719_v21 = vld [vmem:[#allocation2 + $0x4] ss:$12 sps:$4 sm:$0xff]   ;;  %374 = vst [vmem:[#allocation2 + $0x24] sm:$0x33] %v371_v17  ;;  %v397_v23 = vrot.slane %v394_v19, 4  ;;  %v658_v25 = vcombine.low %v437_v16, %v439_v20 }
  0xa1   : > { %507 = vmatprep.subr.bf16.mxu0 %v719_v21 }
  0xa2   : > { %v399_v26 = vsel %vm217_vm3, %v397_v23, %v398_v22  ;;  %508 = vmatpush1.bf16.msra.mxu0 %v658_v25  ;;  %v426_v28 = vpop.permute.xlu1 %425 }
  0xa3   : > { %v401_v27 = vsel %vm400_vm10, %v394_v19, %v399_v26  ;;  %v424_v29 = vpop.permute.xlu0 %423  ;;  %v428_v30 = vrot.slane %v426_v28, 4  ;;  %435 = vst.msk [vmem:[#allocation2 + $0x38] sm:$0x3] %vm192_vm0, %v426_v28 }
  0xa4   : > { %404 = vst [vmem:[#allocation2 + $0x24] sm:$0xcc] %v401_v27  ;;  %v427_v31 = vrot.slane %v424_v29, 4 }
  0xa6   : > { %v429_v32 = vsel %vm217_vm3, %v427_v31, %v428_v30  ;;  %v721_v34 = vld [vmem:[#allocation2 + $0x20] ss:$12 sps:$4 sm:$0xff]  }
  0xa7   : > { %v431_v33 = vsel %vm430_vm11, %v424_v29, %v429_v32  ;;  %679 = vmatpush3.bf16.msra.mxu1 %v721_v34 }
  0xa8   : > { %434 = vst [vmem:[#allocation2 + $0x30] sm:$0x33] %v431_v33  ;;  %680 = vmatprep.subr.bf16.mxu1 %v741_v24 }
  0xaa   : > { %v725_v37 = vld [vmem:[#allocation2 + $0x38] ss:$0 sps:$4 sm:$0x33]  }
  0xab   : > { %v722_v35 = vld [vmem:[#allocation2 + $0x1c] ss:$12 sps:$4 sm:$0xff]   ;;  %v724_v36 = vld [vmem:[#allocation2 + $0x18] ss:$12 sps:$4 sm:$0xff]   ;;  %v505_v38 = vsel %vm497_vm12, %v725_v37, 0 }
  0xac   : > { %509 = vmatprep.subr.bf16.mxu0 %v722_v35  ;;  %681 = vmatpush3.bf16.msra.mxu1 %v505_v38 }
  0xad   : > { %510 = vmatpush1.bf16.msra.mxu0 %v724_v36 }
  0xaf   : > { %v445_v39 = vld [vmem:[#allocation2 + $0x30] sm:$0x33]  ;;  %683 = vmatmul.mubr.msk.bf16.vlgmr.msra.gmra.mrb[0].mxu1 %vm493_vm13, %v436_v40 }
  0xb0   : > { %v665_v41 = vcombine.high %v445_v39, %v445_v39  ;;  %v664_v42 = vcombine.low %v445_v39, %v445_v39 }
  0xb2   : > { %667 = vmatprep.subr.msk.bf16.mxu0 %vm497_vm12, %v665_v41  ;;  %v499_v43 = vsel %vm497_vm12, %v664_v42, 0 }
  0xb3   : > { %512 = vmatpush1.bf16.msra.mxu0 %v499_v43 }
  0xb4   : > { %v451_v24 = vpop.permute.xlu0 %450 }
  0xb6   : > { %668 = vmatmul.mubr.msk.bf16.vlgmr.msra.gmra.mrb[0].mxu0 %vm493_vm13, %v436_v40 }
 0x182   : > { %v582_v44 = vpop.f32.mrb[0].mxu1 }
 0x183   : > { %v684_v45 = vpop.f32.mrb[1].mxu1  ;;  %v583_v46 = vadd.f32 %v582_v44, %v451_v24 }
 0x184   : > { %v585_v47 = vpop.f32.mrb[2].mxu1 }
 0x185   : > { %v590_v48 = vmax.f32 %v583_v46, 0.0  ;;  %v685_v49 = vpop.f32.mrb[3].mxu1 }
 0x187   : > { %594 = vst.msk [vmem:[%s170_s6 + $0x10] sm:$0xff] %vm593_vm14, %v590_v48 }
 0x189   : > { %v541_v50 = vpop.f32.mrb[0].mxu0 }
 0x18a   : > { %v542_v51 = vadd.f32 %v541_v50, %v451_v24  ;;  %v543_v52 = vpop.f32.mrb[1].mxu0 }
 0x18b   : > { %v544_v53 = vadd.f32 %v543_v52, %v451_v24  ;;  %v545_v54 = vpop.f32.mrb[2].mxu0 }
 0x18c   : > { %v588_v55 = vmax.f32 %v542_v51, 0.0  ;;  %v546_v56 = vpop.f32.mrb[3].mxu0 }
 0x18d   : > { %v589_v57 = vmax.f32 %v544_v53, 0.0 }
 0x18e   : > { %591 = vst [vmem:[%s170_s6] sm:$0xff] %v588_v55 }
 0x18f   : > { %592 = vst [vmem:[%s170_s6 + $0x8] sm:$0xff] %v589_v57 }
 0x190 PF: > { %s13_s12 = sadd.s32 1, %s734_s12  }
 0x191   : > { %p10_p4 = scmp.ge.s32.totalorder %s13_s12, 4  }
 0x193   :  { %12 = sbr.rel (!%p10_p4) target bundleno = 1 (0x1), region = 62 }

</bundles_post_ra>
